<compile_context>
chip_gen: v7x
topology: tpu7x:2x2x1
jax: 0.10.0
libtpu: 0.0.40
codegen_flags: <defaults>
</compile_context>

<pallas_src>
import jax
import jax.numpy as jnp
from jax import lax
from jax.experimental import pallas as pl
from jax.experimental.pallas import tpu as pltpu

LANES = 128          # vreg lane width: last dim of every block
SUBLANES = 8         # f32 sublane granularity
MAX_TILE_ROWS = 256  # rows per grid step (256*128*4B*2 arrays ~ 256 KB/step)


def _make_focal_kernel(n_valid, tile_rows, gamma, eps):
    """Kernel factory; n_valid / tile_rows / gamma / eps are static Python values."""

    def kernel(x_ref, t_ref, out_ref):
        step = pl.program_id(0)

        # Output block index is constant across the grid -> VMEM-resident accumulator.
        @pl.when(step == 0)
        def _():
            out_ref[...] = jnp.zeros_like(out_ref)

        x = x_ref[...]                      # (tile_rows, LANES) f32 logits
        t = t_ref[...]                      # (tile_rows, LANES) f32 targets in {0,1}

        p = jax.nn.sigmoid(x)               # EUP
        pt = p * t + (1.0 - p) * (1.0 - t)
        one_m_pt = 1.0 - pt

        # gamma == 2 (module default): square == one VPU multiply, no pow lowering.
        if gamma == 2:
            focal = one_m_pt * one_m_pt
        elif gamma == 1:
            focal = one_m_pt
        else:
            focal = jnp.power(one_m_pt, jnp.float32(gamma))

        loss = -focal * jnp.log(pt + eps)

        # Mask out the flat-padding tail (mask built in-kernel: no extra HBM stream).
        base = step * (tile_rows * LANES)
        rid = lax.broadcasted_iota(jnp.int32, loss.shape, 0)
        cid = lax.broadcasted_iota(jnp.int32, loss.shape, 1)
        mask = (base + rid * LANES + cid) < n_valid
        loss = jnp.where(mask, loss, 0.0)

        # Two-stage reduction (lane then sublane), accumulate into resident output.
        partial = jnp.sum(loss, axis=1, keepdims=True)          # (tile_rows, 1)
        out_ref[...] += jnp.sum(partial, axis=0, keepdims=True)  # (1, 1)

    return kernel


def focal_loss(inputs, targets, *, alpha=0.25, gamma=2, eps=1e-10):
    """Pallas TPU FocalLoss forward. Returns a scalar f32 loss (matches loss.sum()).

    Note: `alpha` is accepted for signature fidelity; in the original forward
    alpha_t is computed but never applied to the loss, so it has no effect.
    """
    del alpha  # dead code in the reference forward

    x = inputs.reshape(-1).astype(jnp.float32)
    t = targets.reshape(-1).astype(jnp.float32)
    n = x.shape[0]

    # Lane-dense repack: flat -> (rows_p, 128) with rows_p a multiple of the tile.
    rows = pl.cdiv(n, LANES)
    rows8 = pl.cdiv(rows, SUBLANES) * SUBLANES
    tile_rows = min(rows8, MAX_TILE_ROWS)
    rows_p = pl.cdiv(rows8, tile_rows) * tile_rows
    pad = rows_p * LANES - n

    x2 = jnp.pad(x, (0, pad)).reshape(rows_p, LANES)
    t2 = jnp.pad(t, (0, pad)).reshape(rows_p, LANES)

    grid = (rows_p // tile_rows,)
    out = pl.pallas_call(
        _make_focal_kernel(n, tile_rows, gamma, eps),
        out_shape=jax.ShapeDtypeStruct((1, 1), jnp.float32),
        grid=grid,
        in_specs=[
            pl.BlockSpec((tile_rows, LANES), lambda i: (i, 0)),
            pl.BlockSpec((tile_rows, LANES), lambda i: (i, 0)),
        ],
        out_specs=pl.BlockSpec((1, 1), lambda i: (0, 0)),
        compiler_params=pltpu.CompilerParams(
            dimension_semantics=("arbitrary",)),  # reduction axis (output-resident acc)
    )(x2, t2)
    return out[0, 0]


# ------------------------------ reference (plain JAX) ------------------------
def reference_focal_loss(inputs, targets, *, alpha=0.25, gamma=2, eps=1e-10):
    x = inputs.astype(jnp.float32)
    t = targets.astype(jnp.float32)
    p = jax.nn.sigmoid(x)
    pt = p * t + (1.0 - p) * (1.0 - t)
    # alpha_t is computed but unused in the original forward -> omitted here too.
    loss = -1.0 * jnp.power(1.0 - pt, gamma) * jnp.log(pt + eps)
    return jnp.sum(loss)


if __name__ == "__main__":
    key = jax.random.PRNGKey(0)
    kx, kt = jax.random.split(key)

    # Small shapes consistent with a per-pixel / per-logit binary focal loss.
    shape = (2, 4, 16, 16)                                   # (B, C, H, W) logits
    x = jax.random.normal(kx, shape, jnp.float32) * 2.0
    target = (jax.random.uniform(kt, shape) > 0.5).astype(jnp.int32)  # binary targets

    out = focal_loss(x, target, alpha=0.25, gamma=2, eps=1e-10)
    out = jax.block_until_ready(out)

    ref = reference_focal_loss(x, target, alpha=0.25, gamma=2, eps=1e-10)
    assert out.shape == (), out.shape
    assert bool(jnp.isfinite(out))
    assert bool(jnp.allclose(out, ref, atol=1e-4, rtol=1e-4)), (out, ref)
    print("KERNEL_OK")
</pallas_src>

<mosaic_0001>
module attributes {stable_mosaic.version = 11 : i64} {
  func.func @kernel(%arg0: i32, %arg1: memref<16x128xf32, #tpu.memory_space<vmem>>, %arg2: memref<16x128xf32, #tpu.memory_space<vmem>>, %arg3: memref<1x1xf32, #tpu.memory_space<vmem>>) attributes {dimension_semantics = [#tpu.dimension_semantics<arbitrary>], iteration_bounds = array<i64: 1>, scalar_prefetch = 0 : i64, scratch_operands = 0 : i64, tpu.core_type = #tpu.core_type<tc>, window_params = [{transform_indices = @transform_0, window_bounds = array<i64: 16, 128>}, {transform_indices = @transform_1, window_bounds = array<i64: 16, 128>}, {pipeline_mode = #tpu.pipeline_mode<synchronous>, transform_indices = @transform_2, window_bounds = array<i64: 1, 1>}]} {
    %c0_i32 = arith.constant 0 : i32
    %0 = arith.cmpi eq, %arg0, %c0_i32 : i32
    %1 = arith.extui %0 : i1 to i32
    %c0_i32_0 = arith.constant 0 : i32
    %2 = arith.cmpi ne, %1, %c0_i32_0 : i32
    scf.if %2 {
      %cst_17 = arith.constant 0.000000e+00 : f32
      %45 = vector.broadcast %cst_17 : f32 to vector<1x1xf32>
      %c0_18 = arith.constant 0 : index
      %c0_19 = arith.constant 0 : index
      %46 = vector.load %arg3[%c0_18, %c0_19] : memref<1x1xf32, #tpu.memory_space<vmem>>, vector<1x1xf32>
      tpu.vector_store %arg3[%c0_18, %c0_19], %45 {strides = array<i32>} : memref<1x1xf32, #tpu.memory_space<vmem>>, vector<1x1xf32>,
    } else {
    }
    %c0 = arith.constant 0 : index
    %c0_1 = arith.constant 0 : index
    %3 = vector.load %arg1[%c0, %c0_1] : memref<16x128xf32, #tpu.memory_space<vmem>>, vector<16x128xf32>
    %c0_2 = arith.constant 0 : index
    %c0_3 = arith.constant 0 : index
    %4 = vector.load %arg2[%c0_2, %c0_3] : memref<16x128xf32, #tpu.memory_space<vmem>>, vector<16x128xf32>
    %5 = arith.negf %3 : vector<16x128xf32>
    %6 = math.exp %5 : vector<16x128xf32>
    %cst = arith.constant 1.000000e+00 : f32
    %7 = vector.broadcast %cst : f32 to vector<16x128xf32>
    %8 = arith.addf %7, %6 : vector<16x128xf32>
    %9 = arith.divf %7, %8 : vector<16x128xf32>
    %10 = arith.mulf %9, %4 : vector<16x128xf32>
    %cst_4 = arith.constant 1.000000e+00 : f32
    %11 = vector.broadcast %cst_4 : f32 to vector<16x128xf32>
    %12 = arith.subf %11, %9 : vector<16x128xf32>
    %cst_5 = arith.constant 1.000000e+00 : f32
    %13 = vector.broadcast %cst_5 : f32 to vector<16x128xf32>
    %14 = arith.subf %13, %4 : vector<16x128xf32>
    %15 = arith.mulf %12, %14 : vector<16x128xf32>
    %16 = arith.addf %10, %15 : vector<16x128xf32>
    %cst_6 = arith.constant 1.000000e+00 : f32
    %17 = vector.broadcast %cst_6 : f32 to vector<16x128xf32>
    %18 = arith.subf %17, %16 : vector<16x128xf32>
    %19 = arith.mulf %18, %18 : vector<16x128xf32>
    %cst_7 = arith.constant 0.000000e+00 : f32
    %20 = vector.broadcast %cst_7 : f32 to vector<16x128xf32>
    %21 = arith.subf %20, %19 : vector<16x128xf32>
    %cst_8 = arith.constant 1.000000e-10 : f32
    %22 = vector.broadcast %cst_8 : f32 to vector<16x128xf32>
    %23 = arith.addf %16, %22 : vector<16x128xf32>
    %24 = math.log %23 : vector<16x128xf32>
    %25 = arith.mulf %21, %24 : vector<16x128xf32>
    %c2048_i32 = arith.constant 2048 : i32
    %26 = arith.muli %arg0, %c2048_i32 : i32
    %27 = tpu.iota {dimensions = array<i32: 0>} : vector<16x128xi32>
    %28 = tpu.iota {dimensions = array<i32: 1>} : vector<16x128xi32>
    %c128_i32 = arith.constant 128 : i32
    %29 = vector.broadcast %c128_i32 : i32 to vector<16x128xi32>
    %30 = arith.muli %27, %29 : vector<16x128xi32>
    %31 = vector.broadcast %26 : i32 to vector<16x128xi32>
    %32 = arith.addi %31, %30 : vector<16x128xi32>
    %33 = arith.addi %32, %28 : vector<16x128xi32>
    %c2048_i32_9 = arith.constant 2048 : i32
    %34 = vector.broadcast %c2048_i32_9 : i32 to vector<16x128xi32>
    %35 = arith.cmpi slt, %33, %34 : vector<16x128xi32>
    %cst_10 = arith.constant 0.000000e+00 : f32
    %36 = vector.broadcast %cst_10 : f32 to vector<16x128xf32>
    %37 = arith.select %35, %25, %36 : vector<16x128xi1>, vector<16x128xf32>
    %cst_11 = arith.constant dense<0.000000e+00> : vector<16xf32>
    %38 = vector.multi_reduction <add>, %37, %cst_11 [1] : vector<16x128xf32> to vector<16xf32>
    %39 = vector.shape_cast %38 : vector<16xf32> to vector<16x1xf32>
    %c0_12 = arith.constant 0 : index
    %c0_13 = arith.constant 0 : index
    %40 = vector.load %arg3[%c0_12, %c0_13] : memref<1x1xf32, #tpu.memory_space<vmem>>, vector<1x1xf32>
    %cst_14 = arith.constant dense<0.000000e+00> : vector<1xf32>
    %41 = vector.multi_reduction <add>, %39, %cst_14 [0] : vector<16x1xf32> to vector<1xf32>
    %42 = vector.shape_cast %41 : vector<1xf32> to vector<1x1xf32>
    %43 = arith.addf %40, %42 : vector<1x1xf32>
    %c0_15 = arith.constant 0 : index
    %c0_16 = arith.constant 0 : index
    %44 = vector.load %arg3[%c0_15, %c0_16] : memref<1x1xf32, #tpu.memory_space<vmem>>, vector<1x1xf32>
    tpu.vector_store %arg3[%c0_15, %c0_16], %43 {strides = array<i32>} : memref<1x1xf32, #tpu.memory_space<vmem>>, vector<1x1xf32>,
    return
  }
  func.func @transform_0(%arg0: i32) -> (i32, i32) {
    %c0_i32 = arith.constant 0 : i32
    %c0_i32_0 = arith.constant 0 : i32
    return %arg0, %c0_i32 : i32, i32
  }
  func.func @transform_1(%arg0: i32) -> (i32, i32) {
    %c0_i32 = arith.constant 0 : i32
    %c0_i32_0 = arith.constant 0 : i32
    return %arg0, %c0_i32 : i32, i32
  }
  func.func @transform_2(%arg0: i32) -> (i32, i32) {
    %c0_i32 = arith.constant 0 : i32
    %c0_i32_0 = arith.constant 0 : i32
    %c0_i32_1 = arith.constant 0 : i32
    return %c0_i32, %c0_i32_0 : i32, i32
  }
}

</mosaic_0001>

<bundles_post_ra>
// kernel: tpu_custom_call.1
= control target key start
LH: loop header
LB: loop body
LE: loop exit
PB: predicated region body
PF: predicated region fallthrough
CT: control target
= control target key end

     0   :  { %7 = vsyncpa [#allocation3], 0  ;;  %s285_s0 = inlined_call_operand.hbm [shape: f32[16,128], index: 0, kind: input, shape index: {}]   ;;  %s286_s1 = inlined_call_operand.hbm [shape: f32[16,128], index: 1, kind: input, shape index: {}]   ;;  %s287_s2 = inlined_call_operand.hbm [shape: f32[1,1], index: 2, kind: output, shape index: {}]  }
   0x1   :  { %8 = vsyncpa [#allocation6], 0 }
   0x2   :  { %9 = vsyncpa [#allocation4], 0  ;;  %s226_s9 = smov [#allocation2]   ;;  %s154_s13 = scalar_lea.hbm %s285_s0, 256 }
   0x3   :  { %s15_s10 = sshll.u32 %s226_s9, 4  ;;  %p155_p0 = scmp.ne.s32.totalorder %s285_s0, %s154_s13  ;;  %s16_s10 = int_to_ptr.vmem [resolvable:$true] %s15_s10 }
   0x4   :  { %p158_p1 = scmp.lt.u32.totalorder %s154_s13, %s285_s0 }
   0x6   :  { %p160_p2 = pnand %p158_p1, %p155_p0 }
   0x8   :  { %163 = shalt.err (!%p160_p2)
}
   0x9   :  { %s164_s18 = scalar_lea.vmem %s16_s10, 256  ;;  %p169_p4 = scmp.lt.s32.totalorder %s16_s10, %s16_s10 }
   0xa   :  { %p165_p3 = scmp.ne.s32.totalorder %s16_s10, %s164_s18  ;;  %p170_p5 = scmp.lt.s32.totalorder %s164_s18, %s164_s18 }
   0xc   :  { %p171_p6 = por %p170_p5, %p169_p4 }
   0xe   :  { %p172_p7 = pnand %p171_p6, %p165_p3 }
  0x10   :  { %175 = shalt.err (!%p172_p7)
}
  0x11   :  { %s227_s19 = smov 128   ;;  %s228_s20 = smov 8  }
  0x12   :  { %21 = dma.hbm_to_vmem [thread:$0]  %s285_s0, 256, %s16_s10, [#allocation3], %s227_s19, %s227_s19, %s228_s20  }
  0x13   :  { %s229_s23 = smov [#allocation5]   ;;  %s176_s27 = scalar_lea.hbm %s286_s1, 256 }
  0x14   :  { %s27_s24 = sshll.u32 %s229_s23, 4  ;;  %p177_p8 = scmp.ne.s32.totalorder %s286_s1, %s176_s27  ;;  %s28_s24 = int_to_ptr.vmem [resolvable:$true] %s27_s24 }
  0x15   :  { %p180_p9 = scmp.lt.u32.totalorder %s176_s27, %s286_s1 }
  0x17   :  { %p182_p10 = pnand %p180_p9, %p177_p8 }
  0x19   :  { %185 = shalt.err (!%p182_p10)
}
  0x1a   :  { %s186_s4 = scalar_lea.vmem %s28_s24, 256  ;;  %p191_p12 = scmp.lt.s32.totalorder %s28_s24, %s28_s24 }
  0x1b   :  { %p187_p11 = scmp.ne.s32.totalorder %s28_s24, %s186_s4  ;;  %p192_p13 = scmp.lt.s32.totalorder %s186_s4, %s186_s4 }
  0x1d   :  { %p193_p0 = por %p192_p13, %p191_p12 }
  0x1f   :  { %p194_p1 = pnand %p193_p0, %p187_p11 }
  0x21   :  { %197 = shalt.err (!%p194_p1)
}
  0x22   :  { %33 = dma.hbm_to_vmem [thread:$0]  %s286_s1, 256, %s28_s24, [#allocation6], %s227_s19, %s227_s19, %s228_s20  }
  0x23   :  { %220 = dma.done.wait [#allocation3], 256  }
  0x24   :  { %221 = vsyncadd [#allocation3], 4294967040 }
  0x25   :  { %222 = dma.done.wait [#allocation6], 256  }
  0x26   :  { %223 = vsyncadd [#allocation6], 4294967040  ;;  %v46_v0 = vld [vmem:[#allocation2] sm:$0xff]  ;;  %v47_v1 = vld [vmem:[#allocation2 + $0x8] sm:$0xff]  ;;  %v87_v21 = vlaneseq  ;;  %vm44_vm2 = vcmask 0   ;;  %v230_v46 = vmov 0.0  }
  0x27   :  { %v134_v2 = vmul.f32 -1.442695, %v46_v0  ;;  %v135_v3 = vmul.f32 -1.442695, %v47_v1  ;;  %v48_v8 = vld [vmem:[#allocation5] sm:$0xff]  ;;  %v49_v9 = vld [vmem:[#allocation5 + $0x8] sm:$0xff] }
  0x28   :  { %v66_v10 = vsub.f32 1.0, %v48_v8  ;;  %v67_v12 = vsub.f32 1.0, %v49_v9  ;;  %v88_v25 = vshrl.u32 %v87_v21, 7  ;;  %v91_v29 = vand.u32 127, %v87_v21  ;;  %45 = vst.msk [vmem:[#allocation7] sm:$0x1] %vm44_vm2, %v230_v46 }
  0x29   :  { %142 = vpow2.f32 %v134_v2  ;;  %s231_s1 = smov [#allocation7]  }
  0x2a   :  { %144 = vpow2.f32 %v135_v3  ;;  %v89_v28 = vadd.s32 8, %v88_v25  ;;  %v92_v30 = vmul.u32 128, %v88_v25  ;;  %s124_s6 = sshll.u32 %s231_s1, 4  ;;  %s125_s6 = int_to_ptr.vmem [resolvable:$true] %s124_s6 }
  0x2b   :  { %s198_s7 = scalar_lea.vmem %s125_s6, 16  ;;  %s202_s8 = scalar_lea.vmem %s125_s6, 32 }
  0x2c   :  { %v93_v33 = vmul.u32 128, %v89_v28  ;;  %v97_v34 = vadd.s32 %v92_v30, %v91_v29  ;;  %p199_p2 = scmp.ne.s32.totalorder %s125_s6, %s198_s7  ;;  %p203_p3 = scmp.lt.s32.totalorder %s125_s6, %s125_s6 }
  0x2d   :  { %p204_p4 = scmp.lt.s32.totalorder %s202_s8, %s198_s7 }
  0x2e   :  { %v98_v38 = vadd.s32 %v93_v33, %v91_v29  ;;  %vm99_vm0 = vcmp.lt.s32.totalorder %v97_v34, 2048 }
  0x2f   :  { %v107_v55 = vld [vmem:[#allocation7] sm:$0x1]  ;;  %p205_p5 = por %p204_p4, %p203_p3 }
  0x30   :  { %vm100_vm1 = vcmp.lt.s32.totalorder %v98_v38, 2048 }
  0x31   :  { %p206_p6 = pnand %p205_p5, %p199_p2 }
  0x33   :  { %v143_v4 = vpop.eup %142 }
  0x34   :  { %v145_v5 = vpop.eup %144  ;;  %v56_v6 = vadd.f32 1.0, %v143_v4 }
  0x35   :  { %v57_v7 = vadd.f32 1.0, %v145_v5 }
  0x36   :  { %146 = vrcp.f32 %v56_v6 }
  0x37   :  { %148 = vrcp.f32 %v57_v7 }
  0x40   :  { %v147_v11 = vpop.eup %146 }
  0x41   :  { %v149_v13 = vpop.eup %148  ;;  %v62_v14 = vmul.f32 %v147_v11, %v48_v8  ;;  %v64_v15 = vsub.f32 1.0, %v147_v11 }
  0x42   :  { %v63_v16 = vmul.f32 %v149_v13, %v49_v9  ;;  %v65_v17 = vsub.f32 1.0, %v149_v13 }
  0x43   :  { %v68_v18 = vmul.f32 %v66_v10, %v64_v15 }
  0x44   :  { %v69_v19 = vmul.f32 %v67_v12, %v65_v17 }
  0x45   :  { %v70_v20 = vadd.f32 %v68_v18, %v62_v14 }
  0x46   :  { %v71_v22 = vadd.f32 %v69_v19, %v63_v16 }
  0x47   :  { %v78_v23 = vadd.f32 1e-10, %v70_v20  ;;  %v72_v26 = vsub.f32 1.0, %v70_v20 }
  0x48   :  { %v79_v24 = vadd.f32 1e-10, %v71_v22  ;;  %v73_v27 = vsub.f32 1.0, %v71_v22 }
  0x49   :  { %150 = vlog2.f32 %v78_v23  ;;  %v74_v31 = vmul.f32 %v72_v26, %v72_v26 }
  0x4a   :  { %152 = vlog2.f32 %v79_v24  ;;  %v75_v32 = vmul.f32 %v73_v27, %v73_v27 }
  0x4b   :  { %v76_v35 = vsub.f32 0.0, %v74_v31 }
  0x4c   :  { %v77_v37 = vsub.f32 0.0, %v75_v32 }
  0x53   :  { %v151_v36 = vpop.eup %150 }
  0x54   :  { %v153_v39 = vpop.eup %152  ;;  %v81_v40 = vmul.f32 0.6931472, %v151_v36 }
  0x55   :  { %v83_v41 = vmul.f32 0.6931472, %v153_v39 }
  0x56   :  { %v84_v42 = vmul.f32 %v81_v40, %v76_v35 }
  0x57   :  { %v85_v43 = vmul.f32 %v83_v41, %v77_v37 }
  0x58   :  { %v101_v44 = vsel %vm99_vm0, %v84_v42, 0.0 }
  0x59   :  { %103 = vadd.xlane.f32.xlu0 %v101_v44  ;;  %v102_v45 = vsel %vm100_vm1, %v85_v43, 0.0 }
  0x5d   :  { %105 = vadd.xlane.f32.xlu0 %v102_v45 }
  0xe6   :  { %v104_v47 = vpop.xlane.xlu0 %103 }
  0xea   :  { %v106_v48 = vpop.xlane.xlu0 %105 }
  0xeb   :  { %v108_v49 = vadd.f32 %v106_v48, %v104_v47 }
  0xed   :  { %v109_v50 = vrot.slane %v108_v49, 4 }
  0xef   :  { %v110_v51 = vadd.f32 %v109_v50, %v108_v49 }
  0xf1   :  { %v111_v52 = vrot.slane %v110_v51, 2 }
  0xf3   :  { %v112_v53 = vadd.f32 %v111_v52, %v110_v51 }
  0xf5   :  { %v113_v54 = vrot.slane %v112_v53, 1 }
  0xf7   :  { %v114_v56 = vadd.f32 %v113_v54, %v112_v53 }
  0xf9   :  { %v115_v57 = vadd.f32 %v114_v56, %v107_v55 }
  0xfb   :  { %117 = vst.msk [vmem:[#allocation7] sm:$0x1] %vm44_vm2, %v115_v57 }
  0xfc   :  { %209 = shalt.err (!%p206_p6)
}
  0xfd   :  { %s210_s11 = scalar_lea.hbm %s287_s2, 16 }
  0xfe   :  { %p211_p7 = scmp.ne.s32.totalorder %s287_s2, %s210_s11  ;;  %p214_p8 = scmp.lt.u32.totalorder %s210_s11, %s287_s2 }
 0x100   :  { %p216_p9 = pnand %p214_p8, %p211_p7 }
 0x102   :  { %219 = shalt.err (!%p216_p9)
}
 0x103   :  { %127 = dma.vmem_to_hbm [thread:$0]  %s125_s6, 16, %s287_s2, [#allocation4]  }
 0x104   :  { %224 = dma.done.wait [#allocation4], 16  }
 0x105   :  { %225 = vsyncadd [#allocation4], 4294967280 }
 0x106   :  { %131 = vsyncpa [#allocation3], 1 }
 0x107   :  { %132 = vsyncpa [#allocation6], 1 }
 0x108   :  { %133 = vsyncpa [#allocation4], 1 }

</bundles_post_ra>
